<compile_context>
chip_gen: v5e
topology: v5e:2x2
jax: 0.10.0
libtpu: 0.0.40
codegen_flags: <defaults>
</compile_context>

<pallas_src>
import functools

import jax
import jax.numpy as jnp
from jax import lax
from jax.experimental import pallas as pl
from jax.experimental.pallas import tpu as pltpu


# ---------------------------------------------------------------------------
# Kernel 1: K/V projection, written directly in head-major (H, M, hd) layout.
# ---------------------------------------------------------------------------
def _kv_proj_kernel(x_ref, wkv_ref, bkv_ref, k_ref, v_ref, *, num_heads):
    E = x_ref.shape[-1]
    hd = E // num_heads
    cdt = wkv_ref.dtype

    kv = jnp.dot(x_ref[...].astype(cdt), wkv_ref[...],
                 preferred_element_type=jnp.float32) + bkv_ref[0]
    k = kv[:, :E]
    v = kv[:, E:]
    # Head split happens once per row tile here, never inside the attention
    # inner loop of kernel 2.
    k_ref[...] = jnp.stack(
        [k[:, h * hd:(h + 1) * hd] for h in range(num_heads)], axis=0
    ).astype(k_ref.dtype)
    v_ref[...] = jnp.stack(
        [v[:, h * hd:(h + 1) * hd] for h in range(num_heads)], axis=0
    ).astype(v_ref.dtype)


# ---------------------------------------------------------------------------
# Kernel 2: flash attention (online softmax over KV tiles) + out-proj + LN1 +
#           FFN + LN2 for one q-row tile.
# ---------------------------------------------------------------------------
def _attn_ffn_kernel(
    x_ref,            # (tm, E)      activations for this q tile (resident over kv axis)
    k_ref,            # (H, tn, hd)  keys for this kv tile (compute dtype)
    v_ref,            # (H, tn, hd)  values for this kv tile
    wq_ref,           # (E, E)       Q projection, 1/sqrt(hd) pre-folded
    bq_ref,           # (1, E)       Q bias, pre-scaled (f32)
    woutr_ref,        # (H, hd, E)   out_proj.weight.T, head-blocked
    bout_ref,         # (1, E)
    wfc1_ref,         # (E, FF)
    bfc1_ref,         # (1, FF)
    wfc2_ref,         # (FF, E)
    bfc2_ref,         # (1, E)
    g1_ref, be1_ref,  # (1, E)  attn LayerNorm
    g2_ref, be2_ref,  # (1, E)  ff LayerNorm
    o_ref,            # (tm, E) f32 output
    q_scr,            # (H, tm, hd)  compute dtype
    m_scr,            # (H, tm, 1)   f32 running max
    l_scr,            # (H, tm, 1)   f32 running sum
    acc_scr,          # (H, tm, hd)  f32 PV accumulator
    *,
    num_heads: int,
    batch: int,
    eps: float,
    approx_recip: bool,
):
    H = num_heads
    tm, E = x_ref.shape
    tn = k_ref.shape[1]
    hd = E // H
    cdt = k_ref.dtype

    kj = pl.program_id(1)
    nkv = pl.num_programs(1)

    # ---- per-q-tile init: Q projection (scaling folded into wq/bq) ----------
    @pl.when(kj == 0)
    def _init():
        q = jnp.dot(x_ref[...].astype(cdt), wq_ref[...],
                    preferred_element_type=jnp.float32) + bq_ref[0]
        q_scr[...] = jnp.stack(
            [q[:, h * hd:(h + 1) * hd] for h in range(H)], axis=0).astype(cdt)
        m_scr[...] = jnp.full_like(m_scr, -1e30)
        l_scr[...] = jnp.zeros_like(l_scr)
        acc_scr[...] = jnp.zeros_like(acc_scr)

    # ---- flash-attention step over this KV tile (all heads batched) ---------
    s = jnp.einsum('hmd,hnd->hmn', q_scr[...], k_ref[...],
                   preferred_element_type=jnp.float32)             # (H, tm, tn)

    # Block-diagonal batch mask: row r of the (T*B, E) slab belongs to batch
    # r % B; attention only couples same-batch rows.
    q_row = pl.program_id(0) * tm + lax.broadcasted_iota(jnp.int32, (tm, tn), 0)
    k_row = kj * tn + lax.broadcasted_iota(jnp.int32, (tm, tn), 1)
    same_batch = (q_row % batch) == (k_row % batch)
    s = jnp.where(same_batch[None], s, -1e30)

    m_prev = m_scr[...]
    m_new = jnp.maximum(m_prev, jnp.max(s, axis=-1, keepdims=True))
    alpha = jnp.exp(m_prev - m_new)
    p = jnp.exp(s - m_new)
    p = jnp.where(same_batch[None], p, 0.0)        # robust to fully-masked rows
    l_scr[...] = alpha * l_scr[...] + jnp.sum(p, axis=-1, keepdims=True)
    acc_scr[...] = alpha * acc_scr[...] + jnp.einsum(
        'hmn,hnd->hmd', p.astype(cdt), v_ref[...],
        preferred_element_type=jnp.float32)
    m_scr[...] = m_new

    # ---- epilogue at the last KV tile: out-proj + LN1 + FFN + LN2 -----------
    @pl.when(kj == nkv - 1)
    def _finalize():
        if approx_recip:                                     # bf16 path only
            o3 = acc_scr[...] * pl.reciprocal(l_scr[...], approx=True)
        else:                                                # exact f32 path
            o3 = acc_scr[...] / l_scr[...]
        o3 = o3.astype(cdt)                                  # (H, tm, hd)

        # Head merge fused into the out-projection:
        #   attn[m, e] = sum_h o3[h] @ Wout.T[h*hd:(h+1)*hd, :]
        attn = jnp.einsum('hmd,hde->hme', o3, woutr_ref[...],
                          preferred_element_type=jnp.float32).sum(axis=0)
        attn = attn + bout_ref[0]

        x_res = x_ref[...].astype(jnp.float32)

        def layer_norm(y, gamma, beta):
            u = jnp.mean(y, axis=-1, keepdims=True)
            var = jnp.mean((y - u) ** 2, axis=-1, keepdims=True)  # two-pass (parity)
            return gamma * ((y - u) * lax.rsqrt(var + eps)) + beta

        x1 = layer_norm(x_res + attn, g1_ref[0], be1_ref[0])

        h1 = jnp.dot(x1.astype(cdt), wfc1_ref[...],
                     preferred_element_type=jnp.float32) + bfc1_ref[0]
        h1 = jnp.maximum(h1, 0.0)
        h2 = jnp.dot(h1.astype(cdt), wfc2_ref[...],
                     preferred_element_type=jnp.float32) + bfc2_ref[0]

        o_ref[...] = layer_norm(x1 + h2, g2_ref[0], be2_ref[0]).astype(o_ref.dtype)


# ---------------------------------------------------------------------------
# Wrapper
# ---------------------------------------------------------------------------
def _weight_spec(block_shape, single_buffered):
    """Resident weight: constant index_map; single-buffered if supported."""
    index_map = lambda *_: (0,) * len(block_shape)
    if single_buffered:
        return pl.BlockSpec(block_shape, index_map, pipeline_mode=pl.Buffered(1))
    return pl.BlockSpec(block_shape, index_map)


def _vmem_limit_bytes():
    # ~75% of the chip's physical VMEM (64 MiB on v7x, 128 MiB on v5e/v6e),
    # capped at 100 MiB.
    try:
        cap = int(pltpu.get_tpu_info().vmem_capacity_bytes)
    except Exception:
        cap = 64 * 1024 * 1024          # conservative fallback (v7x-sized)
    return int(min(100 * 1024 * 1024, cap * 3 // 4))


def _row_tile(M, requested):
    """Largest multiple of 8 that is <= requested and divides M (else M)."""
    t = min(requested, M)
    t = max(8, (t // 8) * 8)
    while t > 8 and M % t:
        t -= 8
    if M % t:
        t = M
    return t


def transformer_layer_pallas(x_tbe, kparams, *, num_heads, eps=1e-12,
                             q_tile=256, kv_tile=256, proj_tile=256):
    """x_tbe: (tgt_len, bsz, embed_dim), same convention as the PyTorch module.

    `kparams` is produced by prepare_params() (weights pre-transposed,
    pre-scaled, head-blocked and pre-cast to the compute dtype exactly once).
    """
    T, B, E = x_tbe.shape
    H = num_heads
    hd = E // H
    assert hd * H == E, "embed_dim must be divisible by num_heads"
    M = T * B
    FF = kparams["wfc1"].shape[1]
    cdt = kparams["wq"].dtype
    is_bf16 = jnp.dtype(cdt) == jnp.dtype(jnp.bfloat16)
    act_dt = jnp.bfloat16 if is_bf16 else jnp.float32

    # (T, B, E) -> (T*B, E) is a free, contiguous reshape (no transpose, no
    # extra HBM round trip).  Row r corresponds to (t = r // B, b = r % B).
    xm = x_tbe.reshape(M, E).astype(act_dt)

    tp = _row_tile(M, proj_tile)     # rows per K/V-projection step
    tq = _row_tile(M, q_tile)        # query rows per attention step
    tk = _row_tile(M, kv_tile)       # kv rows per attention step
    vmem_limit = _vmem_limit_bytes()

    def _run(single_buffered):
        wspec = functools.partial(_weight_spec, single_buffered=single_buffered)

        # ---- kernel 1: K/V projection into head-major (H, M, hd) ------------
        k3, v3 = pl.pallas_call(
            functools.partial(_kv_proj_kernel, num_heads=H),
            grid=(M // tp,),
            in_specs=[
                pl.BlockSpec((tp, E), lambda i: (i, 0)),
                wspec((E, 2 * E)),
                wspec((1, 2 * E)),
            ],
            out_specs=(
                pl.BlockSpec((H, tp, hd), lambda i: (0, i, 0)),
                pl.BlockSpec((H, tp, hd), lambda i: (0, i, 0)),
            ),
            out_shape=(
                jax.ShapeDtypeStruct((H, M, hd), cdt),
                jax.ShapeDtypeStruct((H, M, hd), cdt),
            ),
            compiler_params=pltpu.CompilerParams(
                dimension_semantics=("parallel",),
                vmem_limit_bytes=vmem_limit),
        )(xm, kparams["wkv"], kparams["bkv"])

        # ---- kernel 2: flash attention + out-proj + LN1 + FFN + LN2 ---------
        out = pl.pallas_call(
            functools.partial(_attn_ffn_kernel, num_heads=H, batch=B, eps=eps,
                              approx_recip=is_bf16),
            grid=(M // tq, M // tk),
            in_specs=[
                pl.BlockSpec((tq, E), lambda qi, kj: (qi, 0)),        # x (resident over kv)
                pl.BlockSpec((H, tk, hd), lambda qi, kj: (0, kj, 0)),  # K tile
                pl.BlockSpec((H, tk, hd), lambda qi, kj: (0, kj, 0)),  # V tile
                wspec((E, E)),        # wq   (scaled)
                wspec((1, E)),        # bq   (scaled)
                wspec((H, hd, E)),    # wout (head-blocked)
                wspec((1, E)),        # bout
                wspec((E, FF)),       # wfc1
                wspec((1, FF)),       # bfc1
                wspec((FF, E)),       # wfc2
                wspec((1, E)),        # bfc2
                wspec((1, E)), wspec((1, E)),   # g1, be1
                wspec((1, E)), wspec((1, E)),   # g2, be2
            ],
            out_specs=pl.BlockSpec((tq, E), lambda qi, kj: (qi, 0)),
            out_shape=jax.ShapeDtypeStruct((M, E), jnp.float32),
            scratch_shapes=[
                pltpu.VMEM((H, tq, hd), cdt),          # Q for this q tile
                pltpu.VMEM((H, tq, 1), jnp.float32),   # running max
                pltpu.VMEM((H, tq, 1), jnp.float32),   # running sum
                pltpu.VMEM((H, tq, hd), jnp.float32),  # PV accumulator
            ],
            compiler_params=pltpu.CompilerParams(
                dimension_semantics=("parallel", "arbitrary"),
                vmem_limit_bytes=vmem_limit),
        )(xm, k3, v3,
          kparams["wq"], kparams["bq"], kparams["wout"], kparams["bout"],
          kparams["wfc1"], kparams["bfc1"], kparams["wfc2"], kparams["bfc2"],
          kparams["g1"], kparams["be1"], kparams["g2"], kparams["be2"])
        return out

    try:
        out = _run(single_buffered=True)
    except Exception:
        # pipeline_mode=pl.Buffered(1) not supported on this jax version ->
        # fall back to default (double-buffered) weight specs.
        out = _run(single_buffered=False)

    return out.reshape(T, B, E)   # free reshape back to (tgt_len, bsz, E)


# ---------------------------------------------------------------------------
# Parameters (PyTorch shapes) + one-time kernel-ready prep + pure-JAX reference
# ---------------------------------------------------------------------------
def init_raw_params(key, embed_dim, ff_embed_dim):
    """Parameters in the exact PyTorch shapes of TransformerLayer (non-zero
    biases / LN params so the test exercises them)."""
    E, FF = embed_dim, ff_embed_dim
    ks = jax.random.split(key, 12)
    std = 0.02
    return {
        "in_proj_weight": std * jax.random.normal(ks[0], (3 * E, E), jnp.float32),
        "in_proj_bias": 0.02 * jax.random.normal(ks[1], (3 * E,), jnp.float32),
        "out_proj_weight": std * jax.random.normal(ks[2], (E, E), jnp.float32),
        "out_proj_bias": 0.02 * jax.random.normal(ks[3], (E,), jnp.float32),
        "fc1_weight": std * jax.random.normal(ks[4], (FF, E), jnp.float32),
        "fc1_bias": 0.02 * jax.random.normal(ks[5], (FF,), jnp.float32),
        "fc2_weight": std * jax.random.normal(ks[6], (E, FF), jnp.float32),
        "fc2_bias": 0.02 * jax.random.normal(ks[7], (E,), jnp.float32),
        "ln1_weight": 1.0 + 0.1 * jax.random.normal(ks[8], (E,), jnp.float32),
        "ln1_bias": 0.1 * jax.random.normal(ks[9], (E,), jnp.float32),
        "ln2_weight": 1.0 + 0.1 * jax.random.normal(ks[10], (E,), jnp.float32),
        "ln2_bias": 0.1 * jax.random.normal(ks[11], (E,), jnp.float32),
    }


def prepare_params(raw, *, num_heads, compute_dtype=jnp.float32):
    """One-time prep: transpose weights, fold 1/sqrt(hd) into the Q projection,
    reshape the out-projection per head, and cast MXU operands to the compute
    dtype — so no per-call transposes / casts happen.  bf16 is the recommended
    compute dtype on all of v5e/v6e/v7x."""
    E = raw["out_proj_weight"].shape[0]
    H = num_heads
    hd = E // H
    scale = float(hd) ** -0.5
    cdt = compute_dtype

    w_in_t = raw["in_proj_weight"].T            # (E, 3E)
    b_in = raw["in_proj_bias"]
    return {
        "wq": (w_in_t[:, :E] * scale).astype(cdt),            # (E, E), pre-scaled
        "bq": (b_in[:E] * scale).reshape(1, E).astype(jnp.float32),
        "wkv": w_in_t[:, E:].astype(cdt),                      # (E, 2E)
        "bkv": b_in[E:].reshape(1, 2 * E).astype(jnp.float32),
        "wout": raw["out_proj_weight"].T.reshape(H, hd, E).astype(cdt),
        "bout": raw["out_proj_bias"].reshape(1, E).astype(jnp.float32),
        "wfc1": raw["fc1_weight"].T.astype(cdt),               # (E, FF)
        "bfc1": raw["fc1_bias"].reshape(1, -1).astype(jnp.float32),
        "wfc2": raw["fc2_weight"].T.astype(cdt),               # (FF, E)
        "bfc2": raw["fc2_bias"].reshape(1, E).astype(jnp.float32),
        "g1": raw["ln1_weight"].reshape(1, E).astype(jnp.float32),
        "be1": raw["ln1_bias"].reshape(1, E).astype(jnp.float32),
        "g2": raw["ln2_weight"].reshape(1, E).astype(jnp.float32),
        "be2": raw["ln2_bias"].reshape(1, E).astype(jnp.float32),
    }


def transformer_layer_ref(x_tbe, raw, *, num_heads, eps=1e-12):
    """Pure-JAX f32 reference mirroring the PyTorch forward (dropout=identity,
    need_weights=False, with_external=False)."""
    T, B, E = x_tbe.shape
    H = num_heads
    hd = E // H

    def ln(y, g, b):
        u = jnp.mean(y, -1, keepdims=True)
        s = jnp.mean((y - u) ** 2, -1, keepdims=True)
        return g * ((y - u) / jnp.sqrt(s + eps)) + b

    x = x_tbe
    qkv = jnp.einsum("tbe,fe->tbf", x, raw["in_proj_weight"]) + raw["in_proj_bias"]
    q = qkv[..., :E] * (float(hd) ** -0.5)
    k, v = qkv[..., E:2 * E], qkv[..., 2 * E:]

    def split_heads(z):   # (T, B, E) -> (B*H, T, hd), PyTorch ordering
        return jnp.transpose(z.reshape(T, B * H, hd), (1, 0, 2))

    qh, kh, vh = split_heads(q), split_heads(k), split_heads(v)
    w = jax.nn.softmax(jnp.einsum("ntd,nsd->nts", qh, kh), axis=-1)
    a = jnp.einsum("nts,nsd->ntd", w, vh)
    a = jnp.transpose(a, (1, 0, 2)).reshape(T, B, E)
    a = jnp.einsum("tbe,fe->tbf", a, raw["out_proj_weight"]) + raw["out_proj_bias"]
    x1 = ln(x + a, raw["ln1_weight"], raw["ln1_bias"])
    h = jax.nn.relu(jnp.einsum("tbe,fe->tbf", x1, raw["fc1_weight"]) + raw["fc1_bias"])
    h = jnp.einsum("tbf,ef->tbe", h, raw["fc2_weight"]) + raw["fc2_bias"]
    return ln(x1 + h, raw["ln2_weight"], raw["ln2_bias"])


if __name__ == "__main__":
    # TransformerLayer(embed_dim=32, ff_embed_dim=64, num_heads=4, dropout=0.0)
    T, B, E, H, FF = 8, 2, 32, 4, 64

    key = jax.random.PRNGKey(0)
    k_x, k_p = jax.random.split(key)
    x = jax.random.normal(k_x, (T, B, E), jnp.float32)   # (tgt_len, bsz, embed_dim)
    raw = init_raw_params(k_p, E, FF)

    ref = transformer_layer_ref(x, raw, num_heads=H)

    # f32 MXU path — small tiles so the (q, kv) grid + online softmax and the
    # projection grid are actually exercised (grids: (2,) and (2, 2)).
    params_f32 = prepare_params(raw, num_heads=H, compute_dtype=jnp.float32)
    out_f32 = jax.block_until_ready(
        transformer_layer_pallas(x, params_f32, num_heads=H,
                                 q_tile=8, kv_tile=8, proj_tile=8))
    assert out_f32.shape == (T, B, E)
    assert jnp.allclose(out_f32, ref, rtol=2e-3, atol=2e-3), "f32 mismatch vs reference"

    # bf16 MXU fast path (bf16 operands/activations, f32 accumulate + softmax/LN)
    params_bf16 = prepare_params(raw, num_heads=H, compute_dtype=jnp.bfloat16)
    out_bf16 = jax.block_until_ready(
        transformer_layer_pallas(x, params_bf16, num_heads=H,
                                 q_tile=8, kv_tile=8, proj_tile=8))
    assert jnp.allclose(out_bf16, ref, rtol=1e-1, atol=1e-1), "bf16 mismatch vs reference"

    print("KERNEL_OK")
</pallas_src>

<mosaic_0001>
module attributes {stable_mosaic.version = 11 : i64} {
  func.func @_kv_proj_kernel(%arg0: i32, %arg1: memref<8x32xf32, #tpu.memory_space<vmem>>, %arg2: memref<32x64xf32, #tpu.memory_space<vmem>>, %arg3: memref<1x64xf32, #tpu.memory_space<vmem>>, %arg4: memref<4x8x8xf32, #tpu.memory_space<vmem>>, %arg5: memref<4x8x8xf32, #tpu.memory_space<vmem>>) attributes {dimension_semantics = [#tpu.dimension_semantics<parallel>], iteration_bounds = array<i64: 2>, scalar_prefetch = 0 : i64, scratch_operands = 0 : i64, tpu.core_type = #tpu.core_type<tc>, window_params = [{transform_indices = @transform_0, window_bounds = array<i64: 8, 32>}, {pipeline_mode = #tpu.pipeline_mode<synchronous>, transform_indices = @transform_1, window_bounds = array<i64: 32, 64>}, {pipeline_mode = #tpu.pipeline_mode<synchronous>, transform_indices = @transform_2, window_bounds = array<i64: 1, 64>}, {transform_indices = @transform_3, window_bounds = array<i64: 4, 8, 8>}, {transform_indices = @transform_4, window_bounds = array<i64: 4, 8, 8>}]} {
    %c0 = arith.constant 0 : index
    %c0_0 = arith.constant 0 : index
    %0 = vector.load %arg1[%c0, %c0_0] : memref<8x32xf32, #tpu.memory_space<vmem>>, vector<8x32xf32>
    %c0_1 = arith.constant 0 : index
    %c0_2 = arith.constant 0 : index
    %1 = vector.load %arg2[%c0_1, %c0_2] : memref<32x64xf32, #tpu.memory_space<vmem>>, vector<32x64xf32>
    %cst = arith.constant dense<0.000000e+00> : vector<8x64xf32>
    %2 = tpu.matmul %0, %1, %cst {dimension_numbers = #tpu.dot_dimension_numbers<[1], [0], [0], [1], [0, 0, 1, 1], [], []>} : vector<8x32xf32>, vector<32x64xf32>, vector<8x64xf32> -> vector<8x64xf32>
    %c0_3 = arith.constant 0 : index
    %c0_4 = arith.constant 0 : index
    %3 = vector.load %arg3[%c0_3, %c0_4] : memref<1x64xf32, #tpu.memory_space<vmem>>, vector<1x64xf32>
    %4 = vector.shape_cast %3 : vector<1x64xf32> to vector<64xf32>
    %5 = vector.shape_cast %4 : vector<64xf32> to vector<1x64xf32>
    %6 = vector.broadcast %5 : vector<1x64xf32> to vector<8x64xf32>
    %7 = arith.addf %2, %6 : vector<8x64xf32>
    %8 = vector.extract_strided_slice %7 {offsets = [0, 0], sizes = [8, 32], strides = [1, 1]} : vector<8x64xf32> to vector<8x32xf32>
    %9 = vector.extract_strided_slice %7 {offsets = [0, 32], sizes = [8, 32], strides = [1, 1]} : vector<8x64xf32> to vector<8x32xf32>
    %10 = vector.extract_strided_slice %8 {offsets = [0, 0], sizes = [8, 8], strides = [1, 1]} : vector<8x32xf32> to vector<8x8xf32>
    %11 = vector.extract_strided_slice %8 {offsets = [0, 8], sizes = [8, 8], strides = [1, 1]} : vector<8x32xf32> to vector<8x8xf32>
    %12 = vector.extract_strided_slice %8 {offsets = [0, 16], sizes = [8, 8], strides = [1, 1]} : vector<8x32xf32> to vector<8x8xf32>
    %13 = vector.extract_strided_slice %8 {offsets = [0, 24], sizes = [8, 8], strides = [1, 1]} : vector<8x32xf32> to vector<8x8xf32>
    %14 = vector.shape_cast %10 : vector<8x8xf32> to vector<1x8x8xf32>
    %15 = vector.shape_cast %11 : vector<8x8xf32> to vector<1x8x8xf32>
    %16 = vector.shape_cast %12 : vector<8x8xf32> to vector<1x8x8xf32>
    %17 = vector.shape_cast %13 : vector<8x8xf32> to vector<1x8x8xf32>
    %18 = tpu.concatenate %14, %15, %16, %17 in 0 : vector<1x8x8xf32>, vector<1x8x8xf32>, vector<1x8x8xf32>, vector<1x8x8xf32> -> vector<4x8x8xf32>
    %c0_5 = arith.constant 0 : index
    %c0_6 = arith.constant 0 : index
    %c0_7 = arith.constant 0 : index
    %19 = vector.load %arg4[%c0_5, %c0_6, %c0_7] : memref<4x8x8xf32, #tpu.memory_space<vmem>>, vector<4x8x8xf32>
    tpu.vector_store %arg4[%c0_5, %c0_6, %c0_7], %18 {strides = array<i32>} : memref<4x8x8xf32, #tpu.memory_space<vmem>>, vector<4x8x8xf32>,
    %20 = vector.extract_strided_slice %9 {offsets = [0, 0], sizes = [8, 8], strides = [1, 1]} : vector<8x32xf32> to vector<8x8xf32>
    %21 = vector.extract_strided_slice %9 {offsets = [0, 8], sizes = [8, 8], strides = [1, 1]} : vector<8x32xf32> to vector<8x8xf32>
    %22 = vector.extract_strided_slice %9 {offsets = [0, 16], sizes = [8, 8], strides = [1, 1]} : vector<8x32xf32> to vector<8x8xf32>
    %23 = vector.extract_strided_slice %9 {offsets = [0, 24], sizes = [8, 8], strides = [1, 1]} : vector<8x32xf32> to vector<8x8xf32>
    %24 = vector.shape_cast %20 : vector<8x8xf32> to vector<1x8x8xf32>
    %25 = vector.shape_cast %21 : vector<8x8xf32> to vector<1x8x8xf32>
    %26 = vector.shape_cast %22 : vector<8x8xf32> to vector<1x8x8xf32>
    %27 = vector.shape_cast %23 : vector<8x8xf32> to vector<1x8x8xf32>
    %28 = tpu.concatenate %24, %25, %26, %27 in 0 : vector<1x8x8xf32>, vector<1x8x8xf32>, vector<1x8x8xf32>, vector<1x8x8xf32> -> vector<4x8x8xf32>
    %c0_8 = arith.constant 0 : index
    %c0_9 = arith.constant 0 : index
    %c0_10 = arith.constant 0 : index
    %29 = vector.load %arg5[%c0_8, %c0_9, %c0_10] : memref<4x8x8xf32, #tpu.memory_space<vmem>>, vector<4x8x8xf32>
    tpu.vector_store %arg5[%c0_8, %c0_9, %c0_10], %28 {strides = array<i32>} : memref<4x8x8xf32, #tpu.memory_space<vmem>>, vector<4x8x8xf32>,
    return
  }
  func.func @transform_0(%arg0: i32) -> (i32, i32) {
    %c0_i32 = arith.constant 0 : i32
    %c0_i32_0 = arith.constant 0 : i32
    return %arg0, %c0_i32 : i32, i32
  }
  func.func @transform_1(%arg0: i32) -> (i32, i32) {
    %c0_i32 = arith.constant 0 : i32
    %c0_i32_0 = arith.constant 0 : i32
    %c0_i32_1 = arith.constant 0 : i32
    return %c0_i32, %c0_i32_0 : i32, i32
  }
  func.func @transform_2(%arg0: i32) -> (i32, i32) {
    %c0_i32 = arith.constant 0 : i32
    %c0_i32_0 = arith.constant 0 : i32
    %c0_i32_1 = arith.constant 0 : i32
    return %c0_i32, %c0_i32_0 : i32, i32
  }
  func.func @transform_3(%arg0: i32) -> (i32, i32, i32) {
    %c0_i32 = arith.constant 0 : i32
    %c0_i32_0 = arith.constant 0 : i32
    %c0_i32_1 = arith.constant 0 : i32
    return %c0_i32, %arg0, %c0_i32_0 : i32, i32, i32
  }
  func.func @transform_4(%arg0: i32) -> (i32, i32, i32) {
    %c0_i32 = arith.constant 0 : i32
    %c0_i32_0 = arith.constant 0 : i32
    %c0_i32_1 = arith.constant 0 : i32
    return %c0_i32, %arg0, %c0_i32_0 : i32, i32, i32
  }
}

module attributes {stable_mosaic.version = 11 : i64} {
  func.func @_kv_proj_kernel(%arg0: i32, %arg1: memref<8x32xf32, #tpu.memory_space<vmem>>, %arg2: memref<32x64xf32, #tpu.memory_space<vmem>>, %arg3: memref<1x64xf32, #tpu.memory_space<vmem>>, %arg4: memref<4x8x8xf32, #tpu.memory_space<vmem>>, %arg5: memref<4x8x8xf32, #tpu.memory_space<vmem>>) attributes {dimension_semantics = [#tpu.dimension_semantics<parallel>], iteration_bounds = array<i64: 2>, scalar_prefetch = 0 : i64, scratch_operands = 0 : i64, tpu.core_type = #tpu.core_type<tc>, window_params = [{transform_indices = @transform_0, window_bounds = array<i64: 8, 32>}, {pipeline_mode = #tpu.pipeline_mode<synchronous>, transform_indices = @transform_1, window_bounds = array<i64: 32, 64>}, {pipeline_mode = #tpu.pipeline_mode<synchronous>, transform_indices = @transform_2, window_bounds = array<i64: 1, 64>}, {transform_indices = @transform_3, window_bounds = array<i64: 4, 8, 8>}, {transform_indices = @transform_4, window_bounds = array<i64: 4, 8, 8>}]} {
    %c0 = arith.constant 0 : index
    %c0_0 = arith.constant 0 : index
    %0 = vector.load %arg1[%c0, %c0_0] : memref<8x32xf32, #tpu.memory_space<vmem>>, vector<8x32xf32>
    %c0_1 = arith.constant 0 : index
    %c0_2 = arith.constant 0 : index
    %1 = vector.load %arg2[%c0_1, %c0_2] : memref<32x64xf32, #tpu.memory_space<vmem>>, vector<32x64xf32>
    %cst = arith.constant dense<0.000000e+00> : vector<8x64xf32>
    %2 = tpu.matmul %0, %1, %cst {dimension_numbers = #tpu.dot_dimension_numbers<[1], [0], [0], [1], [0, 0, 1, 1], [], []>} : vector<8x32xf32>, vector<32x64xf32>, vector<8x64xf32> -> vector<8x64xf32>
    %c0_3 = arith.constant 0 : index
    %c0_4 = arith.constant 0 : index
    %3 = vector.load %arg3[%c0_3, %c0_4] : memref<1x64xf32, #tpu.memory_space<vmem>>, vector<1x64xf32>
    %4 = vector.shape_cast %3 : vector<1x64xf32> to vector<64xf32>
    %5 = vector.shape_cast %4 : vector<64xf32> to vector<1x64xf32>
    %6 = vector.broadcast %5 : vector<1x64xf32> to vector<8x64xf32>
    %7 = arith.addf %2, %6 : vector<8x64xf32>
    %8 = vector.extract_strided_slice %7 {offsets = [0, 0], sizes = [8, 32], strides = [1, 1]} : vector<8x64xf32> to vector<8x32xf32>
    %9 = vector.extract_strided_slice %7 {offsets = [0, 32], sizes = [8, 32], strides = [1, 1]} : vector<8x64xf32> to vector<8x32xf32>
    %10 = vector.extract_strided_slice %8 {offsets = [0, 0], sizes = [8, 8], strides = [1, 1]} : vector<8x32xf32> to vector<8x8xf32>
    %11 = vector.extract_strided_slice %8 {offsets = [0, 8], sizes = [8, 8], strides = [1, 1]} : vector<8x32xf32> to vector<8x8xf32>
    %12 = vector.extract_strided_slice %8 {offsets = [0, 16], sizes = [8, 8], strides = [1, 1]} : vector<8x32xf32> to vector<8x8xf32>
    %13 = vector.extract_strided_slice %8 {offsets = [0, 24], sizes = [8, 8], strides = [1, 1]} : vector<8x32xf32> to vector<8x8xf32>
    %14 = vector.shape_cast %10 : vector<8x8xf32> to vector<1x8x8xf32>
    %15 = vector.shape_cast %11 : vector<8x8xf32> to vector<1x8x8xf32>
    %16 = vector.shape_cast %12 : vector<8x8xf32> to vector<1x8x8xf32>
    %17 = vector.shape_cast %13 : vector<8x8xf32> to vector<1x8x8xf32>
    %18 = tpu.concatenate %14, %15, %16, %17 in 0 : vector<1x8x8xf32>, vector<1x8x8xf32>, vector<1x8x8xf32>, vector<1x8x8xf32> -> vector<4x8x8xf32>
    %c0_5 = arith.constant 0 : index
    %c0_6 = arith.constant 0 : index
    %c0_7 = arith.constant 0 : index
    %19 = vector.load %arg4[%c0_5, %c0_6, %c0_7] : memref<4x8x8xf32, #tpu.memory_space<vmem>>, vector<4x8x8xf32>
    tpu.vector_store %arg4[%c0_5, %c0_6, %c0_7], %18 {strides = array<i32>} : memref<4x8x8xf32, #tpu.memory_space<vmem>>, vector<4x8x8xf32>,
    %20 = vector.extract_strided_slice %9 {offsets = [0, 0], sizes = [8, 8], strides = [1, 1]} : vector<8x32xf32> to vector<8x8xf32>
    %21 = vector.extract_strided_slice %9 {offsets = [0, 8], sizes = [8, 8], strides = [1, 1]} : vector<8x32xf32> to vector<8x8xf32>
    %22 = vector.extract_strided_slice %9 {offsets = [0, 16], sizes = [8, 8], strides = [1, 1]} : vector<8x32xf32> to vector<8x8xf32>
    %23 = vector.extract_strided_slice %9 {offsets = [0, 24], sizes = [8, 8], strides = [1, 1]} : vector<8x32xf32> to vector<8x8xf32>
    %24 = vector.shape_cast %20 : vector<8x8xf32> to vector<1x8x8xf32>
    %25 = vector.shape_cast %21 : vector<8x8xf32> to vector<1x8x8xf32>
    %26 = vector.shape_cast %22 : vector<8x8xf32> to vector<1x8x8xf32>
    %27 = vector.shape_cast %23 : vector<8x8xf32> to vector<1x8x8xf32>
    %28 = tpu.concatenate %24, %25, %26, %27 in 0 : vector<1x8x8xf32>, vector<1x8x8xf32>, vector<1x8x8xf32>, vector<1x8x8xf32> -> vector<4x8x8xf32>
    %c0_8 = arith.constant 0 : index
    %c0_9 = arith.constant 0 : index
    %c0_10 = arith.constant 0 : index
    %29 = vector.load %arg5[%c0_8, %c0_9, %c0_10] : memref<4x8x8xf32, #tpu.memory_space<vmem>>, vector<4x8x8xf32>
    tpu.vector_store %arg5[%c0_8, %c0_9, %c0_10], %28 {strides = array<i32>} : memref<4x8x8xf32, #tpu.memory_space<vmem>>, vector<4x8x8xf32>,
    return
  }
  func.func @transform_0(%arg0: i32) -> (i32, i32) {
    %c0_i32 = arith.constant 0 : i32
    %c0_i32_0 = arith.constant 0 : i32
    return %arg0, %c0_i32 : i32, i32
  }
  func.func @transform_1(%arg0: i32) -> (i32, i32) {
    %c0_i32 = arith.constant 0 : i32
    %c0_i32_0 = arith.constant 0 : i32
    %c0_i32_1 = arith.constant 0 : i32
    return %c0_i32, %c0_i32_0 : i32, i32
  }
  func.func @transform_2(%arg0: i32) -> (i32, i32) {
    %c0_i32 = arith.constant 0 : i32
    %c0_i32_0 = arith.constant 0 : i32
    %c0_i32_1 = arith.constant 0 : i32
    return %c0_i32, %c0_i32_0 : i32, i32
  }
  func.func @transform_3(%arg0: i32) -> (i32, i32, i32) {
    %c0_i32 = arith.constant 0 : i32
    %c0_i32_0 = arith.constant 0 : i32
    %c0_i32_1 = arith.constant 0 : i32
    return %c0_i32, %arg0, %c0_i32_0 : i32, i32, i32
  }
  func.func @transform_4(%arg0: i32) -> (i32, i32, i32) {
    %c0_i32 = arith.constant 0 : i32
    %c0_i32_0 = arith.constant 0 : i32
    %c0_i32_1 = arith.constant 0 : i32
    return %c0_i32, %arg0, %c0_i32_0 : i32, i32, i32
  }
}

</mosaic_0001>

<bundles_post_ra>
// kernel: tpu_custom_call.1
= control target key start
LH: loop header
LB: loop body
LE: loop exit
PB: predicated region body
PF: predicated region fallthrough
CT: control target
= control target key end

     0   :  { %10 = vsyncpa [#allocation3], 0  ;;  %s861_s0 = inlined_call_operand.hbm [shape: f32[16,32], index: 0, kind: input, shape index: {}]   ;;  %s862_s1 = inlined_call_operand.hbm [shape: f32[32,64], index: 1, kind: input, shape index: {}]   ;;  %s863_s2 = inlined_call_operand.vmem [shape: f32[1,64], index: 2, kind: input, shape index: {}]   ;;  %s864_s3 = inlined_call_operand.vmem [shape: f32[4,16,8], index: 3, kind: output, shape index: {0}]   ;;  %s865_s4 = inlined_call_operand.vmem [shape: f32[4,16,8], index: 4, kind: output, shape index: {1}]  }
   0x1   :  { %12 = vsyncpa [#allocation3 + $0x1], 0 }
   0x2   :  { %13 = vsyncpa [#allocation5], 0  ;;  %s714_s15 = smov 0   ;;  %s716_s16 = smov 0  }
   0x3   :  { %s718_s17 = smov 0   ;;  %s720_s18 = smov 0  }
   0x4 LB: > { %s155_s21 = sshll.u32 %s862_s1, 4  ;;  %s736_s22 = sadd.s32 4294967295, %s680_s18   ;;  %s680_s18 = sphi %s720_s18, %s874_s18   ;;  %s676_s17 = sphi %s718_s17, %s873_s17   ;;  %s672_s16 = sphi %s716_s16, %s872_s16   ;;  %s668_s15 = sphi %s714_s15, %s871_s15   ;;  %s156_s21 = int_to_ptr.hbm [resolvable:$true] %s155_s21 }
   0x5   : > { %p508_p0 = scmp.ge.s32.totalorder %s680_s18, 1  ;;  %p40_p1 = scmp.eq.s32.totalorder %s736_s22, 0 }
   0x6   : > { %p144_p2 = scmp.lt.s32.totalorder %s680_s18, 3  ;;  %s682_s24 = smov [#allocation4]  }
   0x7   : > { %s157_s25 = sshll.u32 %s682_s24, 4  ;;  %s683_s26 = smov 128   ;;  %s158_s25 = int_to_ptr.vmem [resolvable:$true] %s157_s25 }
   0x8   : > { %p741_p3 = pnand %p508_p0, %p144_p2  ;;  %s684_s27 = smov 8  }
   0x9   : > { %s750_s28 = sadd.s32 1, %s680_s18   ;;  %s26_s30 = sadd.s32 1, %s676_s17 }
   0xa   : > { %p531_p4 = pneg %p741_p3  ;;  %s23_s29 = ssub.s32 %s680_s18, %s750_s28 }
   0xb   : > { %p24_p6 = scmp.eq.s32.totalorder %s23_s29, 0  ;;  %p33_p7 = scmp.ne.s32.totalorder %s676_s17, %s672_s16 }
   0xc   : > { %p532_p5 = pnand %p531_p4, %p40_p1  ;;  %p34_p8 = scmp.eq.s32.totalorder %s680_s18, 0 }
   0xd   : > { %p39_p9 = scmp.ne.s32.totalorder %s672_s16, %s668_s15  ;;  %p105_p12 = scmp.eq.s32.totalorder %s736_s22, 1 }
   0xe   : > { %534 = dma.hbm_to_vmem [thread:$0]  (!%p532_p5), %s156_s21, 512, %s158_s25, [#allocation5], %s683_s26, %s683_s26, %s684_s27  }
   0xf   : > { %s760_s5 = scalar_select %p24_p6, %s676_s17, %s26_s30  }
  0x10   : > { %p762_p10 = por %p34_p8, %p33_p7  ;;  %p768_p11 = por %p40_p1, %p39_p9 }
  0x11   : > { %p540_p13 = scmp.lt.s32.totalorder %s680_s18, 2  ;;  %s174_s8 = sand.u32 1, %s676_s17  }
  0x12   : > { %s512_s9 = sshll.u32 %s680_s18, 3  ;;  %p776_p0 = por %p105_p12, %p33_p7 }
  0x13   : > { %s511_s11 = sshll.u32 %s174_s8, 3  ;;  %s182_s14 = scalar_lea.hbm %s861_s0, %s512_s9 }
  0x14   : > { %s184_s15 = sshll.u32 %s182_s14, 4  ;;  %s178_s19 = scalar_lea.vmem [#allocation2], %s511_s11  ;;  %s185_s15 = int_to_ptr.hbm [resolvable:$true] %s184_s15 }
  0x15   : > { %s186_s20 = sshll.u32 %s178_s19, 4  ;;  %p785_p2 = pnand %p540_p13, %p762_p10  ;;  %s187_s20 = int_to_ptr.vmem [resolvable:$true] %s186_s20 }
  0x16   : > { %s175_s18 = scalar_lea.sflag [#allocation3], %s174_s8  ;;  %s612_s24 = sshra.s32 %s185_s15, 4  ;;  %s613_s24 = int_to_ptr.hbm [resolvable:$true] %s612_s24 }
  0x17   : > { %s614_s25 = scalar_lea.hbm %s613_s24, 8  ;;  %p616_p5 = pneg %p785_p2 }
  0x18   : > { %p615_p4 = scmp.ne.s32.totalorder %s613_s24, %s614_s25  ;;  %s619_s29 = scalar_lea.hbm %s861_s0, 16 }
  0x19   : > { %p620_p8 = scmp.lt.s32.totalorder %s613_s24, %s861_s0  ;;  %p621_p9 = scmp.lt.s32.totalorder %s619_s29, %s614_s25 }
  0x1a   : > { %p617_p6 = pnand %p616_p5, %p615_p4 }
  0x1b   : > { %p622_p10 = por %p621_p9, %p620_p8 }
  0x1c   : > { %p618_p7 = pneg %p617_p6 }
  0x1e   : > { %p623_p12 = pnand %p622_p10, %p618_p7 }
  0x20   : > { %626 = shalt.err (!%p623_p12)
}
  0x21   : > { %538 = dma.hbm_to_vmem [thread:$0]  (!%p785_p2), %s185_s15, 128, %s187_s20, %s175_s18  }
  0x22   : > { %195 = sbr.rel (%p741_p3) target bundleno = 417 (0x1a1), region = 32  ;;  %s802_s8 = sand.u32 (!%p741_p3), 1, %s672_s16  }
  0x23   : > { %s514_s9 = sshll.u32 (!%p741_p3), %s802_s8, 3  ;;  %s198_s11 = scalar_lea.sflag (!%p741_p3), [#allocation3], %s802_s8 }
  0x24   : > { %s201_s12 = scalar_lea.vmem (!%p741_p3), [#allocation2], %s514_s9 }
  0x27   : > { %659 = dma.done.wait (%p768_p11), %s198_s11, 128  }
  0x28   : > { %661 = vsyncadd (%p768_p11), %s198_s11, 4294967168 }
  0x29   : > { %663 = dma.done.wait (%p40_p1), [#allocation5], 512  }
  0x2a   : > { %665 = vsyncadd (%p40_p1), [#allocation5], 4294966784  ;;  %v239_v0 = vld [vmem:[#allocation4 + $0x18] sm:$0xff]  ;;  %v238_v1 = vld [vmem:[#allocation4 + $0x10] sm:$0xff]  ;;  %vm244_vm0 = vcmask 261120   ;;  %s516_s13 = sshll.u32 %s802_s8, 5 }
  0x2b   : > { %260 = vmatpush.msra.mxu0 %v239_v0  ;;  %v237_v2 = vld [vmem:[#allocation4 + $0x8] sm:$0xff]  ;;  %v236_v3 = vld [vmem:[#allocation4] sm:$0xff]  ;;  %v235_v4 = vld [vmem:[%s201_s12] sm:$0xff]  ;;  %vm278_vm1 = vcmask 64512   ;;  %s685_s14 = smov 104   ;;  %s686_s15 = smov 120  }
  0x2c   : > { %v581_v5 = vld [vmem:[%s863_s2] ss:$0 sm:$0xff]  ;;  %s818_s19 = scalar_lea.vmem [#allocation6], %s516_s13  ;;  %s687_s20 = smov 96  }
  0x2d   : > { %261 = vmatpush.msra.mxu0 %v238_v1  ;;  %s688_s21 = smov 112   ;;  %s234_s18 = scalar_lea.vmem [#allocation7], %s516_s13 }
  0x2e   : > { %s521_s24 = sshll.u32 (%p776_p0), %s736_s22, 3 }
  0x2f   : > { %262 = vmatpush.msra.mxu0 %v237_v2  ;;  %s311_s27 = scalar_lea.vmem (%p776_p0), %s864_s3, %s521_s24 }
  0x31   : > { %263 = vmatpush.msra.mxu0 %v236_v3 }
  0x32   : > { %518 = vmatmul.msk.f32.vlgmr.msra.gmra.mxu0 %vm244_vm0, %v235_v4 }
  0xaf   : > { %v265_v6 = vpop.f32.mrf.mxu0 }
  0xb0   : > { %v266_v7 = vadd.f32 %v581_v5, %v265_v6 }
  0xb2   : > { %275 = vrot.lane.b32.xlu1 %v266_v7, %s685_s14  ;;  %269 = vrot.lane.b32.xlu0 %v266_v7, %s686_s15  ;;  %279 = vst.msk [vmem:[%s818_s19] sm:$0xff] %vm278_vm1, %v266_v7 }
  0xb9   : > { %v346_v15 = vld [vmem:[%s818_s19] sm:$0xff] (%p776_p0) }
  0xba   : > { %283 = vrot.lane.b32.xlu1 %v266_v7, %s687_s20  ;;  %272 = vrot.lane.b32.xlu0 %v266_v7, %s688_s21  ;;  %347 = vst [vmem:[%s311_s27] sm:$0xff] (%p776_p0), %v346_v15 }
 0x124   : > { %v276_v8 = vpop.permute.xlu1 %275  ;;  %v270_v9 = vpop.permute.xlu0 %269 }
 0x125   : > { %282 = vst.msk [vmem:[%s818_s19 + $0x18] sm:$0xff] %vm278_vm1, %v276_v8  ;;  %289 = vrot.lane.b32.xlu0 %v276_v8, %s687_s20  ;;  %285 = vrot.lane.b32.xlu2 %v270_v9, %s687_s20 }
 0x126   : > { %280 = vst.msk [vmem:[%s818_s19 + $0x8] sm:$0xff] %vm278_vm1, %v270_v9 }
 0x12c   : > { %v284_v10 = vpop.permute.xlu1 %283  ;;  %v273_v11 = vpop.permute.xlu0 %272  ;;  %v352_v18 = vld [vmem:[%s818_s19 + $0x18] sm:$0xff] (%p776_p0) }
 0x12d   : > { %295 = vst.msk [vmem:[%s234_s18] sm:$0xff] %vm278_vm1, %v284_v10  ;;  %287 = vrot.lane.b32.xlu2 %v273_v11, %s687_s20  ;;  %v348_v16 = vld [vmem:[%s818_s19 + $0x8] sm:$0xff] (%p776_p0) }
 0x12e   : > { %281 = vst.msk [vmem:[%s818_s19 + $0x10] sm:$0xff] %vm278_vm1, %v273_v11 }
 0x12f   : > { %349 = vst [vmem:[%s311_s27 + $0x10] sm:$0xff] (%p776_p0), %v348_v16 }
 0x130   : > { %353 = vst [vmem:[%s311_s27 + $0x30] sm:$0xff] (%p776_p0), %v352_v18 }
 0x135   : > { %v350_v17 = vld [vmem:[%s818_s19 + $0x10] sm:$0xff] (%p776_p0) }
 0x136   : > { %351 = vst [vmem:[%s311_s27 + $0x20] sm:$0xff] (%p776_p0), %v350_v17 }
 0x17f   : > { %v286_v12 = vpop.permute.xlu2 %285 }
 0x180   : > { %296 = vst.msk [vmem:[%s234_s18 + $0x8] sm:$0xff] %vm278_vm1, %v286_v12 }
 0x187   : > { %v288_v13 = vpop.permute.xlu2 %287 }
 0x188   : > { %297 = vst.msk [vmem:[%s234_s18 + $0x10] sm:$0xff] %vm278_vm1, %v288_v13 }
 0x194   : > { %309 = sbr.rel (!%p776_p0) target bundleno = 409 (0x199), region = 44 }
 0x197   : > { %v290_v14 = vpop.permute.xlu0 %289 }
 0x198   : > { %298 = vst.msk [vmem:[%s234_s18 + $0x18] sm:$0xff] %vm278_vm1, %v290_v14 }
 0x199 PF: > { %359 = sbr.rel (!%p776_p0) target bundleno = 417 (0x1a1), region = 82  ;;  %s522_s29 = sshll.u32 (%p776_p0), %s736_s22, 3  ;;  %v396_v19 = vld [vmem:[%s234_s18] sm:$0xff] (%p776_p0)  ;;  %v398_v20 = vld [vmem:[%s234_s18 + $0x8] sm:$0xff] (%p776_p0)  ;;  %v400_v21 = vld [vmem:[%s234_s18 + $0x10] sm:$0xff] (%p776_p0) }
 0x19a   : > { %s361_s8 = scalar_lea.vmem (%p776_p0), %s865_s4, %s522_s29 }
 0x19b   : > { %397 = vst [vmem:[%s361_s8] sm:$0xff] (%p776_p0), %v396_v19 }
 0x19c   : > { %399 = vst [vmem:[%s361_s8 + $0x10] sm:$0xff] (%p776_p0), %v398_v20 }
 0x19d   : > { %401 = vst [vmem:[%s361_s8 + $0x20] sm:$0xff] (%p776_p0), %v400_v21 }
 0x19f   : > { %v402_v22 = vld [vmem:[%s234_s18 + $0x18] sm:$0xff] }
 0x1a0   : > { %403 = vst [vmem:[%s361_s8 + $0x30] sm:$0xff] %v402_v22 }
 0x1a1 PF: > { %p16_p1 = scmp.ge.s32.totalorder %s750_s28, 4   ;;  %s871_s15 = smov %s672_s16 }
 0x1a2   : > { %s872_s16 = smov %s676_s17  ;;  %s873_s17 = smov %s760_s5 }
 0x1a3   : > { %s874_s18 = smov %s750_s28  ;;  %18 = sbr.rel (!%p16_p1) target bundleno = 4 (0x4), region = 164 }
 0x1a8   :  { %426 = vsyncpa [#allocation3], 1 }
 0x1a9   :  { %428 = vsyncpa [#allocation3 + $0x1], 1 }
 0x1aa   :  { %429 = vsyncpa [#allocation5], 1 }

// kernel: tpu_custom_call.1
= control target key start
LH: loop header
LB: loop body
LE: loop exit
PB: predicated region body
PF: predicated region fallthrough
CT: control target
= control target key end

     0   :  { %10 = vsyncpa [#allocation3], 0  ;;  %s861_s0 = inlined_call_operand.hbm [shape: f32[16,32], index: 0, kind: input, shape index: {}]   ;;  %s862_s1 = inlined_call_operand.hbm [shape: f32[32,64], index: 1, kind: input, shape index: {}]   ;;  %s863_s2 = inlined_call_operand.vmem [shape: f32[1,64], index: 2, kind: input, shape index: {}]   ;;  %s864_s3 = inlined_call_operand.vmem [shape: f32[4,16,8], index: 3, kind: output, shape index: {0}]   ;;  %s865_s4 = inlined_call_operand.vmem [shape: f32[4,16,8], index: 4, kind: output, shape index: {1}]  }
   0x1   :  { %12 = vsyncpa [#allocation3 + $0x1], 0 }
   0x2   :  { %13 = vsyncpa [#allocation5], 0  ;;  %s714_s15 = smov 0   ;;  %s716_s16 = smov 0  }
   0x3   :  { %s718_s17 = smov 0   ;;  %s720_s18 = smov 0  }
   0x4 LB: > { %s155_s21 = sshll.u32 %s862_s1, 4  ;;  %s736_s22 = sadd.s32 4294967295, %s680_s18   ;;  %s680_s18 = sphi %s720_s18, %s874_s18   ;;  %s676_s17 = sphi %s718_s17, %s873_s17   ;;  %s672_s16 = sphi %s716_s16, %s872_s16   ;;  %s668_s15 = sphi %s714_s15, %s871_s15   ;;  %s156_s21 = int_to_ptr.hbm [resolvable:$true] %s155_s21 }
   0x5   : > { %p508_p0 = scmp.ge.s32.totalorder %s680_s18, 1  ;;  %p40_p1 = scmp.eq.s32.totalorder %s736_s22, 0 }
   0x6   : > { %p144_p2 = scmp.lt.s32.totalorder %s680_s18, 3  ;;  %s682_s24 = smov [#allocation4]  }
   0x7   : > { %s157_s25 = sshll.u32 %s682_s24, 4  ;;  %s683_s26 = smov 128   ;;  %s158_s25 = int_to_ptr.vmem [resolvable:$true] %s157_s25 }
   0x8   : > { %p741_p3 = pnand %p508_p0, %p144_p2  ;;  %s684_s27 = smov 8  }
   0x9   : > { %s750_s28 = sadd.s32 1, %s680_s18   ;;  %s26_s30 = sadd.s32 1, %s676_s17 }
   0xa   : > { %p531_p4 = pneg %p741_p3  ;;  %s23_s29 = ssub.s32 %s680_s18, %s750_s28 }
   0xb   : > { %p24_p6 = scmp.eq.s32.totalorder %s23_s29, 0  ;;  %p33_p7 = scmp.ne.s32.totalorder %s676_s17, %s672_s16 }
   0xc   : > { %p532_p5 = pnand %p531_p4, %p40_p1  ;;  %p34_p8 = scmp.eq.s32.totalorder %s680_s18, 0 }
   0xd   : > { %p39_p9 = scmp.ne.s32.totalorder %s672_s16, %s668_s15  ;;  %p105_p12 = scmp.eq.s32.totalorder %s736_s22, 1 }
   0xe   : > { %534 = dma.hbm_to_vmem [thread:$0]  (!%p532_p5), %s156_s21, 512, %s158_s25, [#allocation5], %s683_s26, %s683_s26, %s684_s27  }
   0xf   : > { %s760_s5 = scalar_select %p24_p6, %s676_s17, %s26_s30  }
  0x10   : > { %p762_p10 = por %p34_p8, %p33_p7  ;;  %p768_p11 = por %p40_p1, %p39_p9 }
  0x11   : > { %p540_p13 = scmp.lt.s32.totalorder %s680_s18, 2  ;;  %s174_s8 = sand.u32 1, %s676_s17  }
  0x12   : > { %s512_s9 = sshll.u32 %s680_s18, 3  ;;  %p776_p0 = por %p105_p12, %p33_p7 }
  0x13   : > { %s511_s11 = sshll.u32 %s174_s8, 3  ;;  %s182_s14 = scalar_lea.hbm %s861_s0, %s512_s9 }
  0x14   : > { %s184_s15 = sshll.u32 %s182_s14, 4  ;;  %s178_s19 = scalar_lea.vmem [#allocation2], %s511_s11  ;;  %s185_s15 = int_to_ptr.hbm [resolvable:$true] %s184_s15 }
  0x15   : > { %s186_s20 = sshll.u32 %s178_s19, 4  ;;  %p785_p2 = pnand %p540_p13, %p762_p10  ;;  %s187_s20 = int_to_ptr.vmem [resolvable:$true] %s186_s20 }
  0x16   : > { %s175_s18 = scalar_lea.sflag [#allocation3], %s174_s8  ;;  %s612_s24 = sshra.s32 %s185_s15, 4  ;;  %s613_s24 = int_to_ptr.hbm [resolvable:$true] %s612_s24 }
  0x17   : > { %s614_s25 = scalar_lea.hbm %s613_s24, 8  ;;  %p616_p5 = pneg %p785_p2 }
  0x18   : > { %p615_p4 = scmp.ne.s32.totalorder %s613_s24, %s614_s25  ;;  %s619_s29 = scalar_lea.hbm %s861_s0, 16 }
  0x19   : > { %p620_p8 = scmp.lt.s32.totalorder %s613_s24, %s861_s0  ;;  %p621_p9 = scmp.lt.s32.totalorder %s619_s29, %s614_s25 }
  0x1a   : > { %p617_p6 = pnand %p616_p5, %p615_p4 }
  0x1b   : > { %p622_p10 = por %p621_p9, %p620_p8 }
  0x1c   : > { %p618_p7 = pneg %p617_p6 }
  0x1e   : > { %p623_p12 = pnand %p622_p10, %p618_p7 }
  0x20   : > { %626 = shalt.err (!%p623_p12)
}
  0x21   : > { %538 = dma.hbm_to_vmem [thread:$0]  (!%p785_p2), %s185_s15, 128, %s187_s20, %s175_s18  }
  0x22   : > { %195 = sbr.rel (%p741_p3) target bundleno = 417 (0x1a1), region = 32  ;;  %s802_s8 = sand.u32 (!%p741_p3), 1, %s672_s16  }
  0x23   : > { %s514_s9 = sshll.u32 (!%p741_p3), %s802_s8, 3  ;;  %s198_s11 = scalar_lea.sflag (!%p741_p3), [#allocation3], %s802_s8 }
  0x24   : > { %s201_s12 = scalar_lea.vmem (!%p741_p3), [#allocation2], %s514_s9 }
  0x27   : > { %659 = dma.done.wait (%p768_p11), %s198_s11, 128  }
  0x28   : > { %661 = vsyncadd (%p768_p11), %s198_s11, 4294967168 }
  0x29   : > { %663 = dma.done.wait (%p40_p1), [#allocation5], 512  }
  0x2a   : > { %665 = vsyncadd (%p40_p1), [#allocation5], 4294966784  ;;  %v239_v0 = vld [vmem:[#allocation4 + $0x18] sm:$0xff]  ;;  %v238_v1 = vld [vmem:[#allocation4 + $0x10] sm:$0xff]  ;;  %vm244_vm0 = vcmask 261120   ;;  %s516_s13 = sshll.u32 %s802_s8, 5 }
  0x2b   : > { %260 = vmatpush.msra.mxu0 %v239_v0  ;;  %v237_v2 = vld [vmem:[#allocation4 + $0x8] sm:$0xff]  ;;  %v236_v3 = vld [vmem:[#allocation4] sm:$0xff]  ;;  %v235_v4 = vld [vmem:[%s201_s12] sm:$0xff]  ;;  %vm278_vm1 = vcmask 64512   ;;  %s685_s14 = smov 104   ;;  %s686_s15 = smov 120  }
  0x2c   : > { %v581_v5 = vld [vmem:[%s863_s2] ss:$0 sm:$0xff]  ;;  %s818_s19 = scalar_lea.vmem [#allocation6], %s516_s13  ;;  %s687_s20 = smov 96  }
  0x2d   : > { %261 = vmatpush.msra.mxu0 %v238_v1  ;;  %s688_s21 = smov 112   ;;  %s234_s18 = scalar_lea.vmem [#allocation7], %s516_s13 }
  0x2e   : > { %s521_s24 = sshll.u32 (%p776_p0), %s736_s22, 3 }
  0x2f   : > { %262 = vmatpush.msra.mxu0 %v237_v2  ;;  %s311_s27 = scalar_lea.vmem (%p776_p0), %s864_s3, %s521_s24 }
  0x31   : > { %263 = vmatpush.msra.mxu0 %v236_v3 }
  0x32   : > { %518 = vmatmul.msk.f32.vlgmr.msra.gmra.mxu0 %vm244_vm0, %v235_v4 }
  0xaf   : > { %v265_v6 = vpop.f32.mrf.mxu0 }
  0xb0   : > { %v266_v7 = vadd.f32 %v581_v5, %v265_v6 }
  0xb2   : > { %275 = vrot.lane.b32.xlu1 %v266_v7, %s685_s14  ;;  %269 = vrot.lane.b32.xlu0 %v266_v7, %s686_s15  ;;  %279 = vst.msk [vmem:[%s818_s19] sm:$0xff] %vm278_vm1, %v266_v7 }
  0xb9   : > { %v346_v15 = vld [vmem:[%s818_s19] sm:$0xff] (%p776_p0) }
  0xba   : > { %283 = vrot.lane.b32.xlu1 %v266_v7, %s687_s20  ;;  %272 = vrot.lane.b32.xlu0 %v266_v7, %s688_s21  ;;  %347 = vst [vmem:[%s311_s27] sm:$0xff] (%p776_p0), %v346_v15 }
 0x124   : > { %v276_v8 = vpop.permute.xlu1 %275  ;;  %v270_v9 = vpop.permute.xlu0 %269 }
 0x125   : > { %282 = vst.msk [vmem:[%s818_s19 + $0x18] sm:$0xff] %vm278_vm1, %v276_v8  ;;  %289 = vrot.lane.b32.xlu0 %v276_v8, %s687_s20  ;;  %285 = vrot.lane.b32.xlu2 %v270_v9, %s687_s20 }
 0x126   : > { %280 = vst.msk [vmem:[%s818_s19 + $0x8] sm:$0xff] %vm278_vm1, %v270_v9 }
 0x12c   : > { %v284_v10 = vpop.permute.xlu1 %283  ;;  %v273_v11 = vpop.permute.xlu0 %272  ;;  %v352_v18 = vld [vmem:[%s818_s19 + $0x18] sm:$0xff] (%p776_p0) }
 0x12d   : > { %295 = vst.msk [vmem:[%s234_s18] sm:$0xff] %vm278_vm1, %v284_v10  ;;  %287 = vrot.lane.b32.xlu2 %v273_v11, %s687_s20  ;;  %v348_v16 = vld [vmem:[%s818_s19 + $0x8] sm:$0xff] (%p776_p0) }
 0x12e   : > { %281 = vst.msk [vmem:[%s818_s19 + $0x10] sm:$0xff] %vm278_vm1, %v273_v11 }
 0x12f   : > { %349 = vst [vmem:[%s311_s27 + $0x10] sm:$0xff] (%p776_p0), %v348_v16 }
 0x130   : > { %353 = vst [vmem:[%s311_s27 + $0x30] sm:$0xff] (%p776_p0), %v352_v18 }
 0x135   : > { %v350_v17 = vld [vmem:[%s818_s19 + $0x10] sm:$0xff] (%p776_p0) }
 0x136   : > { %351 = vst [vmem:[%s311_s27 + $0x20] sm:$0xff] (%p776_p0), %v350_v17 }
 0x17f   : > { %v286_v12 = vpop.permute.xlu2 %285 }
 0x180   : > { %296 = vst.msk [vmem:[%s234_s18 + $0x8] sm:$0xff] %vm278_vm1, %v286_v12 }
 0x187   : > { %v288_v13 = vpop.permute.xlu2 %287 }
 0x188   : > { %297 = vst.msk [vmem:[%s234_s18 + $0x10] sm:$0xff] %vm278_vm1, %v288_v13 }
 0x194   : > { %309 = sbr.rel (!%p776_p0) target bundleno = 409 (0x199), region = 44 }
 0x197   : > { %v290_v14 = vpop.permute.xlu0 %289 }
 0x198   : > { %298 = vst.msk [vmem:[%s234_s18 + $0x18] sm:$0xff] %vm278_vm1, %v290_v14 }
 0x199 PF: > { %359 = sbr.rel (!%p776_p0) target bundleno = 417 (0x1a1), region = 82  ;;  %s522_s29 = sshll.u32 (%p776_p0), %s736_s22, 3  ;;  %v396_v19 = vld [vmem:[%s234_s18] sm:$0xff] (%p776_p0)  ;;  %v398_v20 = vld [vmem:[%s234_s18 + $0x8] sm:$0xff] (%p776_p0)  ;;  %v400_v21 = vld [vmem:[%s234_s18 + $0x10] sm:$0xff] (%p776_p0) }
 0x19a   : > { %s361_s8 = scalar_lea.vmem (%p776_p0), %s865_s4, %s522_s29 }
 0x19b   : > { %397 = vst [vmem:[%s361_s8] sm:$0xff] (%p776_p0), %v396_v19 }
 0x19c   : > { %399 = vst [vmem:[%s361_s8 + $0x10] sm:$0xff] (%p776_p0), %v398_v20 }
 0x19d   : > { %401 = vst [vmem:[%s361_s8 + $0x20] sm:$0xff] (%p776_p0), %v400_v21 }
 0x19f   : > { %v402_v22 = vld [vmem:[%s234_s18 + $0x18] sm:$0xff] }
 0x1a0   : > { %403 = vst [vmem:[%s361_s8 + $0x30] sm:$0xff] %v402_v22 }
 0x1a1 PF: > { %p16_p1 = scmp.ge.s32.totalorder %s750_s28, 4   ;;  %s871_s15 = smov %s672_s16 }
 0x1a2   : > { %s872_s16 = smov %s676_s17  ;;  %s873_s17 = smov %s760_s5 }
 0x1a3   : > { %s874_s18 = smov %s750_s28  ;;  %18 = sbr.rel (!%p16_p1) target bundleno = 4 (0x4), region = 164 }
 0x1a8   :  { %426 = vsyncpa [#allocation3], 1 }
 0x1a9   :  { %428 = vsyncpa [#allocation3 + $0x1], 1 }
 0x1aa   :  { %429 = vsyncpa [#allocation5], 1 }

</bundles_post_ra>
